<compile_context>
chip_gen: v7x
topology: tpu7x:2x2x1
jax: 0.10.0
libtpu: 0.0.40
codegen_flags: <defaults>
</compile_context>

<pallas_src>
import functools

import jax
import jax.numpy as jnp
from jax import lax
from jax.experimental import pallas as pl
from jax.experimental.pallas import tpu as pltpu


def _round_up(x, m):
    return ((x + m - 1) // m) * m


def _euclidean_kernel(q_ref, p2t_ref, psq_ref, o_ref):
    # q_ref: [bq, D], p2t_ref: [D, P_pad] = (2*c)^T, psq_ref: [1, P_pad] = ||c||^2,
    # o_ref: [bq, P_pad]
    q = q_ref[...]
    # Cross term 2*q.c on the MXU, native-dtype operands, f32 accumulation.
    qp2 = lax.dot_general(q, p2t_ref[...], (((1,), (0,)), ((), ())),
                          preferred_element_type=jnp.float32)          # [bq, P_pad]
    q32 = q.astype(jnp.float32)
    q_sq = jnp.sum(q32 * q32, axis=1, keepdims=True)                    # [bq, 1]
    # -(||q||^2 - 2 q.c + ||c||^2)
    o_ref[...] = (qp2 - q_sq - psq_ref[...]).astype(o_ref.dtype)


def _cosine_kernel(q_ref, pnt_ref, o_ref):
    # q_ref: [bq, D], pnt_ref: [D, P_pad] (prototypes pre-normalized), o_ref: [bq, P_pad]
    q32 = q_ref[...].astype(jnp.float32)
    sumsq = jnp.sum(q32 * q32, axis=1, keepdims=True)                   # [bq, 1]
    # F.normalize semantics: x / max(||x||, 1e-12)  ==  x * rsqrt(max(||x||^2, 1e-24))
    inv_norm = lax.rsqrt(jnp.maximum(sumsq, 1e-24))
    q_n = (q32 * inv_norm).astype(q_ref.dtype)
    o_ref[...] = lax.dot_general(q_n, pnt_ref[...], (((1,), (0,)), ((), ())),
                                 preferred_element_type=jnp.float32
                                 ).astype(o_ref.dtype)


@functools.partial(jax.jit, static_argnames=("metric", "block_q"))
def prototypical_head(query_embeddings, prototypes, metric="euclidean",
                      block_q=512):
    Q, D = query_embeddings.shape
    P, D2 = prototypes.shape
    assert D == D2, "embedding dims must match"

    # --- tile sizing -------------------------------------------------------
    # Big query tiles for MXU / HBM-streaming efficiency, clamped for tiny Q,
    # always a multiple of the 8-row sublane granule.
    bq = min(_round_up(block_q, 8), _round_up(Q, 8))
    # v7x megacore: if a large Q would fit in a single tile, split it in two so
    # both TensorCores get a grid step (only when halves stay >= ~512 rows).
    if Q <= bq and Q >= 1024:
        bq = _round_up((Q + 1) // 2, 8)
    n_steps = -(-Q // bq)                      # cdiv; ragged tail handled by Pallas

    # Lane-dense output: pad P to 128; use the 256-wide v6e/v7x MXU granule
    # once P exceeds one 128-lane vreg.
    p_pad = _round_up(P, 128) if P <= 128 else _round_up(P, 256)

    p = prototypes
    if p_pad != P:
        p = jnp.pad(p, ((0, p_pad - P), (0, 0)))

    # --- VMEM budget -------------------------------------------------------
    in_bytes = jnp.dtype(query_embeddings.dtype).itemsize
    need = (2 * bq * D * in_bytes              # query tile, double-buffered
            + D * p_pad * in_bytes             # prototype slab, single-buffered
            + p_pad * 4                        # ||c||^2 row
            + 2 * bq * p_pad * 4)              # f32 output tile, double-buffered
    vmem_limit = int(min(64 << 20, max(need * 5 // 4 + (2 << 20), 32 << 20)))

    compiler_params = pltpu.CompilerParams(
        dimension_semantics=("parallel",),
        vmem_limit_bytes=vmem_limit,
    )

    grid = (n_steps,)
    q_spec = pl.BlockSpec((bq, D), lambda i: (i, 0))
    # Grid-invariant prototype-side inputs: single buffer (no point double-buffering
    # a block whose index never changes; halves resident footprint on v7x).
    slab_spec = pl.BlockSpec((D, p_pad), lambda i: (0, 0),
                             pipeline_mode=pl.Buffered(1))
    psq_spec = pl.BlockSpec((1, p_pad), lambda i: (0, 0),
                            pipeline_mode=pl.Buffered(1))
    out_spec = pl.BlockSpec((bq, p_pad), lambda i: (i, 0))
    out_shape = jax.ShapeDtypeStruct((Q, p_pad), jnp.float32)

    if metric == "euclidean":
        p32 = p.astype(jnp.float32)
        p_sq = jnp.sum(p32 * p32, axis=1).reshape(1, p_pad)             # [1, P_pad]
        # Fold the factor 2 into the prototypes (exact power-of-two scale).
        p2_t = (p * 2).astype(p.dtype).T                                # [D, P_pad]
        out = pl.pallas_call(
            _euclidean_kernel,
            out_shape=out_shape,
            grid_spec=pltpu.PrefetchScalarGridSpec(
                num_scalar_prefetch=0,
                grid=grid,
                in_specs=[q_spec, slab_spec, psq_spec],
                out_specs=out_spec,
            ),
            compiler_params=compiler_params,
        )(query_embeddings, p2_t, p_sq)
    elif metric == "cosine":
        # Pre-normalize prototypes once in the wrapper (F.normalize semantics),
        # cast back to the matmul dtype, pre-transpose to [D, P_pad].
        p32 = p.astype(jnp.float32)
        p_norm = jnp.maximum(
            jnp.sqrt(jnp.sum(p32 * p32, axis=1, keepdims=True)), 1e-12)
        p_n_t = (p32 / p_norm).astype(p.dtype).T                        # [D, P_pad]
        out = pl.pallas_call(
            _cosine_kernel,
            out_shape=out_shape,
            grid_spec=pltpu.PrefetchScalarGridSpec(
                num_scalar_prefetch=0,
                grid=grid,
                in_specs=[q_spec, slab_spec],
                out_specs=out_spec,
            ),
            compiler_params=compiler_params,
        )(query_embeddings, p_n_t)
    else:
        raise ValueError("Unsupported metric")

    return out[:, :P]


def _euclidean_ref(q, p):
    diff = q[:, None, :] - p[None, :, :]
    return -jnp.sum(diff * diff, axis=2)


def _cosine_ref(q, p):
    qn = q / jnp.maximum(jnp.linalg.norm(q, axis=1, keepdims=True), 1e-12)
    pn = p / jnp.maximum(jnp.linalg.norm(p, axis=1, keepdims=True), 1e-12)
    return qn @ pn.T


if __name__ == "__main__":
    key = jax.random.PRNGKey(0)
    kq, kp, kq2, kp2 = jax.random.split(key, 4)

    # Small shapes consistent with the module: 16 queries, 8 classes, 32-dim.
    Q, P, D = 16, 8, 32
    query = jax.random.normal(kq, (Q, D), dtype=jnp.float32)
    protos = jax.random.normal(kp, (P, D), dtype=jnp.float32)

    out_euc = prototypical_head(query, protos, metric="euclidean")
    out_cos = prototypical_head(query, protos, metric="cosine")
    jax.block_until_ready((out_euc, out_cos))

    ref_euc = _euclidean_ref(query, protos)
    ref_cos = _cosine_ref(query, protos)

    assert out_euc.shape == (Q, P) and out_cos.shape == (Q, P)
    assert jnp.allclose(out_euc, ref_euc, atol=1e-3, rtol=1e-3), "euclidean mismatch"
    assert jnp.allclose(out_cos, ref_cos, atol=1e-5, rtol=1e-5), "cosine mismatch"

    # Ragged shapes (non-multiple Q, P) with a multi-step grid to exercise the
    # cdiv tail-masking path (no wrapper-side query padding anymore).
    Q2, P2, D2 = 40, 5, 64
    query2 = jax.random.normal(kq2, (Q2, D2), dtype=jnp.float32)
    protos2 = jax.random.normal(kp2, (P2, D2), dtype=jnp.float32)

    out_euc2 = prototypical_head(query2, protos2, metric="euclidean", block_q=16)
    out_cos2 = prototypical_head(query2, protos2, metric="cosine", block_q=16)
    jax.block_until_ready((out_euc2, out_cos2))

    assert out_euc2.shape == (Q2, P2) and out_cos2.shape == (Q2, P2)
    assert jnp.allclose(out_euc2, _euclidean_ref(query2, protos2),
                        atol=1e-3, rtol=1e-3), "euclidean (ragged) mismatch"
    assert jnp.allclose(out_cos2, _cosine_ref(query2, protos2),
                        atol=1e-5, rtol=1e-5), "cosine (ragged) mismatch"

    print("KERNEL_OK")
</pallas_src>

<mosaic_0001>
module attributes {stable_mosaic.version = 11 : i64} {
  func.func @_euclidean_kernel(%arg0: i32, %arg1: memref<16x32xf32, #tpu.memory_space<vmem>>, %arg2: memref<32x128xf32, #tpu.memory_space<vmem>>, %arg3: memref<1x128xf32, #tpu.memory_space<vmem>>, %arg4: memref<16x128xf32, #tpu.memory_space<vmem>>) attributes {dimension_semantics = [#tpu.dimension_semantics<parallel>], iteration_bounds = array<i64: 1>, scalar_prefetch = 0 : i64, scratch_operands = 0 : i64, tpu.core_type = #tpu.core_type<tc>, window_params = [{transform_indices = @transform_0, window_bounds = array<i64: 16, 32>}, {pipeline_mode = #tpu.pipeline_mode<synchronous>, transform_indices = @transform_1, window_bounds = array<i64: 32, 128>}, {pipeline_mode = #tpu.pipeline_mode<synchronous>, transform_indices = @transform_2, window_bounds = array<i64: 1, 128>}, {transform_indices = @transform_3, window_bounds = array<i64: 16, 128>}]} {
    %c0 = arith.constant 0 : index
    %c0_0 = arith.constant 0 : index
    %0 = vector.load %arg1[%c0, %c0_0] : memref<16x32xf32, #tpu.memory_space<vmem>>, vector<16x32xf32>
    %c0_1 = arith.constant 0 : index
    %c0_2 = arith.constant 0 : index
    %1 = vector.load %arg2[%c0_1, %c0_2] : memref<32x128xf32, #tpu.memory_space<vmem>>, vector<32x128xf32>
    %cst = arith.constant dense<0.000000e+00> : vector<16x128xf32>
    %2 = tpu.matmul %0, %1, %cst {dimension_numbers = #tpu.dot_dimension_numbers<[1], [0], [0], [1], [0, 0, 1, 1], [], []>} : vector<16x32xf32>, vector<32x128xf32>, vector<16x128xf32> -> vector<16x128xf32>
    %3 = arith.mulf %0, %0 : vector<16x32xf32>
    %cst_3 = arith.constant dense<0.000000e+00> : vector<16xf32>
    %4 = vector.multi_reduction <add>, %3, %cst_3 [1] : vector<16x32xf32> to vector<16xf32>
    %5 = vector.shape_cast %4 : vector<16xf32> to vector<16x1xf32>
    %6 = vector.broadcast %5 : vector<16x1xf32> to vector<16x128xf32>
    %7 = arith.subf %2, %6 : vector<16x128xf32>
    %c0_4 = arith.constant 0 : index
    %c0_5 = arith.constant 0 : index
    %8 = vector.load %arg3[%c0_4, %c0_5] : memref<1x128xf32, #tpu.memory_space<vmem>>, vector<1x128xf32>
    %9 = vector.broadcast %8 : vector<1x128xf32> to vector<16x128xf32>
    %10 = arith.subf %7, %9 : vector<16x128xf32>
    %c0_6 = arith.constant 0 : index
    %c0_7 = arith.constant 0 : index
    %11 = vector.load %arg4[%c0_6, %c0_7] : memref<16x128xf32, #tpu.memory_space<vmem>>, vector<16x128xf32>
    tpu.vector_store %arg4[%c0_6, %c0_7], %10 {strides = array<i32>} : memref<16x128xf32, #tpu.memory_space<vmem>>, vector<16x128xf32>,
    return
  }
  func.func @transform_0(%arg0: i32) -> (i32, i32) {
    %c0_i32 = arith.constant 0 : i32
    %c0_i32_0 = arith.constant 0 : i32
    return %arg0, %c0_i32 : i32, i32
  }
  func.func @transform_1(%arg0: i32) -> (i32, i32) {
    %c0_i32 = arith.constant 0 : i32
    %c0_i32_0 = arith.constant 0 : i32
    %c0_i32_1 = arith.constant 0 : i32
    return %c0_i32, %c0_i32_0 : i32, i32
  }
  func.func @transform_2(%arg0: i32) -> (i32, i32) {
    %c0_i32 = arith.constant 0 : i32
    %c0_i32_0 = arith.constant 0 : i32
    %c0_i32_1 = arith.constant 0 : i32
    return %c0_i32, %c0_i32_0 : i32, i32
  }
  func.func @transform_3(%arg0: i32) -> (i32, i32) {
    %c0_i32 = arith.constant 0 : i32
    %c0_i32_0 = arith.constant 0 : i32
    return %arg0, %c0_i32 : i32, i32
  }
}

</mosaic_0001>

<bundles_post_ra>
// kernel: prototypical_head.1
= control target key start
LH: loop header
LB: loop body
LE: loop exit
PB: predicated region body
PF: predicated region fallthrough
CT: control target
= control target key end

     0   :  { %vm20_vm0 = vcmask 261120   ;;  %s206_s1 = inlined_call_operand.vmem [shape: f32[32,128], index: 1, kind: input, shape index: {}]   ;;  %s207_s0 = inlined_call_operand.vmem [shape: f32[16,32], index: 0, kind: input, shape index: {}]   ;;  %s208_s2 = inlined_call_operand.vmem [shape: f32[1,128], index: 2, kind: input, shape index: {}]   ;;  %s209_s3 = inlined_call_operand.vmem [shape: f32[16,128], index: 3, kind: output, shape index: {}]  }
   0x1   :  { %v16_v0 = vld [vmem:[%s206_s1] sm:$0xff]  ;;  %v17_v1 = vld [vmem:[%s206_s1 + $0x8] sm:$0xff]  ;;  %v18_v2 = vld [vmem:[%s206_s1 + $0x10] sm:$0xff] }
   0x2   :  { %v147_v3 = vpack.c.bf16 %v17_v1, %v16_v0  ;;  %v19_v4 = vld [vmem:[%s206_s1 + $0x18] sm:$0xff]  ;;  %v14_v5 = vld [vmem:[%s207_s0] sm:$0xff]  ;;  %v15_v6 = vld [vmem:[%s207_s0 + $0x8] sm:$0xff] }
   0x3   :  { %v151_v7 = vpack.c.bf16 %v19_v4, %v18_v2  ;;  %144 = vmatprep.mubr.msk.f32.mxu0 %vm20_vm0, %v14_v5  ;;  %v102_v8 = vmul.f32 %v14_v5, %v14_v5  ;;  %v103_v9 = vmul.f32 %v15_v6, %v15_v6  ;;  %v129_v15 = vld [vmem:[%s208_s2] ss:$0 sm:$0xff] }
   0x4   :  { %148 = vmatprep.subr.bf16.mxu0 %v147_v3 }
   0x5   :  { %150 = vmatpush3.bf16.msra.mxu0 %v147_v3  ;;  %v104_v10 = vsel %vm20_vm0, %v102_v8, 0.0  ;;  %v107_v11 = vsel %vm20_vm0, %v103_v9, 0.0 }
   0x6   :  { %152 = vmatprep.subr.bf16.mxu0 %v151_v7  ;;  %105 = vadd.xlane.f32.xlu0 %v104_v10 }
   0x9   :  { %154 = vmatpush3.bf16.msra.mxu0 %v151_v7 }
   0xa   :  { %108 = vadd.xlane.f32.xlu0 %v107_v11 }
   0xc   :  { %145 = vmatmul.mubr.msk.f32.vlgmr.msra.gmra.mrb[0].mxu0 %vm20_vm0, %v15_v6 }
  0x93   :  { %v106_v12 = vpop.xlane.xlu0 %105 }
  0x97   :  { %v109_v13 = vpop.xlane.xlu0 %108 }
  0xdf   :  { %v146_v14 = vpop.f32.mrb[0].mxu0 }
  0xe0   :  { %v111_v16 = vsub.f32 %v146_v14, %v109_v13  ;;  %v93_v17 = vpop.f32.mrb[1].mxu0 }
  0xe1   :  { %v110_v18 = vsub.f32 %v93_v17, %v106_v12 }
  0xe2   :  { %v120_v19 = vsub.f32 %v111_v16, %v129_v15 }
  0xe3   :  { %v119_v20 = vsub.f32 %v110_v18, %v129_v15 }
  0xe4   :  { %122 = vst [vmem:[%s209_s3 + $0x8] sm:$0xff] %v120_v19 }
  0xe5   :  { %121 = vst [vmem:[%s209_s3] sm:$0xff] %v119_v20 }

</bundles_post_ra>
